<compile_context>
chip_gen: v6e
topology: v6e:2x2x1
jax: 0.10.0
libtpu: 0.0.40
codegen_flags: <defaults>
</compile_context>

<pallas_src>
import math
from functools import partial

import jax
import jax.numpy as jnp
from jax.experimental import pallas as pl
from jax.experimental.pallas import tpu as pltpu


def _round_up(a: int, b: int) -> int:
    return ((a + b - 1) // b) * b


def _cdiv(a: int, b: int) -> int:
    return (a + b - 1) // b


def mlp_kernel(x_ref, wfc_ref, bfc_ref, wpj_ref, bpj_ref, o_ref, acc_ref,
               *, approximate_gelu: bool):
    # Shapes per grid step:
    #   x_ref:   (tm, D)  original dtype      wfc_ref: (D, th)  compute dtype
    #   bfc_ref: (1, th)  f32                 wpj_ref: (th, D)  compute dtype
    #   bpj_ref: (1, D)   f32                 o_ref:   (tm, D)  out dtype
    #   acc_ref: (tm, D)  f32 scratch (resident across the h axis)
    h_idx = pl.program_id(1)

    @pl.when(h_idx == 0)
    def _init():
        acc_ref[...] = jnp.zeros_like(acc_ref)

    # Cast the activation tile to the compute dtype inside the kernel (VPU),
    # instead of a separate XLA cast pass in the wrapper.
    x = x_ref[...].astype(wfc_ref.dtype)

    # c_fc slab: MXU matmul, f32 accumulation, bias add in f32.
    h = jnp.dot(x, wfc_ref[...], preferred_element_type=jnp.float32)
    h = h + bfc_ref[...].astype(jnp.float32)

    if approximate_gelu:
        # tanh-approx GELU: transcendental rides the EUP slot (perf option for
        # VALU-bound v6e/v7x); deviates ~1e-3 rel. from torch's exact erf GELU.
        c = jnp.float32(0.7978845608028654)   # sqrt(2/pi)
        h = 0.5 * h * (1.0 + jnp.tanh(c * (h + 0.044715 * (h * h * h))))
    else:
        # Exact erf GELU — matches torch.nn.GELU() default.
        inv_sqrt2 = jnp.float32(1.0 / math.sqrt(2.0))
        h = 0.5 * h * (1.0 + jax.lax.erf(h * inv_sqrt2))

    # c_proj slab: cast back to the weight dtype for the MXU, accumulate in f32.
    acc_ref[...] += jnp.dot(h.astype(wpj_ref.dtype), wpj_ref[...],
                            preferred_element_type=jnp.float32)

    @pl.when(h_idx == pl.num_programs(1) - 1)
    def _finish():
        y = acc_ref[...] + bpj_ref[...].astype(jnp.float32)
        # dropout(p=0.0) is the identity (inference semantics); nothing to do.
        o_ref[...] = y.astype(o_ref.dtype)


def mlp_pallas(x, w_fc, b_fc, w_proj, b_proj, *, tm=512, th=None,
               compute_dtype=jnp.bfloat16, out_dtype=None,
               approximate_gelu=False):
    """GPT-2 MLP forward: gelu(x @ w_fc + b_fc) @ w_proj + b_proj.

    x:      (B, T, D)
    w_fc:   (D, 4D)    b_fc:   (4D,)      (Linear weights stored as (in, out))
    w_proj: (4D, D)    b_proj: (D,)
    returns (B, T, D) in `out_dtype` (defaults to x.dtype).

    compute_dtype: matmul-input dtype (bf16 default for bf16-native MXUs);
    accumulation / bias / GELU are always f32.
    """
    B, T, D = x.shape
    Din, H = w_fc.shape
    assert Din == D and w_proj.shape == (H, D)
    assert b_fc.shape == (H,) and b_proj.shape == (D,)
    M = B * T
    out_dtype = x.dtype if out_dtype is None else out_dtype
    ic = jnp.dtype(compute_dtype).itemsize
    ix = jnp.dtype(x.dtype).itemsize
    oc = jnp.dtype(out_dtype).itemsize

    # ---- row tile: large for MXU occupancy, but guarantee >=2 grid steps
    # whenever M allows so the "parallel" axis shards across both v7x
    # TensorCores (harmless extra step elsewhere). ----
    tm = max(8, min(_round_up(tm, 8), _round_up(M, 8)))
    if M > 8 and _cdiv(M, tm) < 2:
        tm = max(8, _round_up(_cdiv(M, 2), 8))

    # ---- generation-aware VMEM budget ----
    try:
        vmem_cap = int(pltpu.get_tpu_info().vmem_capacity_bytes)
    except Exception:
        vmem_cap = 64 << 20            # conservative fallback (v7x per-TC)
    budget = int(0.70 * vmem_cap)

    def working_set(tm_, th_):
        return (2 * 2 * D * th_ * ic        # two weight slabs, double-buffered
                + 2 * tm_ * D * ix          # x tile (input dtype), dbl-buffered
                + 2 * tm_ * D * oc          # out tile, double-buffered
                + tm_ * D * 4               # f32 accumulator scratch
                + tm_ * th_ * (4 + ic)      # f32 h slab + compute-dtype copy
                + 2 * th_ * 4 + D * 4)      # biases

    def choose_th(tm_):
        if working_set(tm_, H) <= budget:
            return H                        # fully resident weights
        for c in (4096, 3072, 2048, 1536, 1280, 1024, 768, 640, 512, 384, 256, 128):
            if c < H and H % c == 0 and c % 128 == 0 and working_set(tm_, c) <= budget:
                return c
        for c in (512, 384, 256, 128):      # last resort (ignore budget)
            if c < H and H % c == 0 and c % 128 == 0:
                return c
        return H

    if th is None:
        th = choose_th(tm)
        while working_set(tm, th) > budget and tm > 128:
            tm = max(128, _round_up(tm // 2, 8))
            th = choose_th(tm)
    else:
        assert th == H or (H % th == 0 and th % 128 == 0), \
            "th must divide H and be a multiple of 128"

    grid_m = _cdiv(M, tm)
    grid_h = H // th

    # ---- operands ----
    x2 = x.reshape(M, D)                           # no astype / pad: kernel casts,
                                                   # Pallas masks the ragged tail.
    # TODO(synk): store bf16 master copies of w_fc / w_proj at model init so the
    # casts below are no-ops (astype of an equal dtype does not copy).
    wfc = w_fc.astype(compute_dtype)
    wpj = w_proj.astype(compute_dtype)
    bfc2 = b_fc.reshape(1, H).astype(jnp.float32)
    bpj2 = b_proj.reshape(1, D).astype(jnp.float32)

    # ---- specs: single-buffer grid-invariant blocks, default pipeline else ----
    def spec(shape, imap, single):
        if single:
            return pl.BlockSpec(shape, imap, pipeline_mode=pl.Buffered(1))
        return pl.BlockSpec(shape, imap)

    resident = (grid_h == 1)
    in_specs = [
        pl.BlockSpec((tm, D), lambda i, h: (i, 0)),            # x rows (pipelined)
        spec((D, th), lambda i, h: (0, h), resident),          # w_fc slab
        spec((1, th), lambda i, h: (0, h), resident),          # b_fc slab
        spec((th, D), lambda i, h: (h, 0), resident),          # w_proj slab
        spec((1, D), lambda i, h: (0, 0), True),               # b_proj (constant)
    ]
    out_specs = pl.BlockSpec((tm, D), lambda i, h: (i, 0))

    ws = working_set(tm, th)
    vmem_limit = int(min(0.85 * vmem_cap, max(32 << 20, 1.3 * ws + (4 << 20))))

    m_eff = grid_m * tm
    cost = pl.CostEstimate(
        flops=4 * m_eff * D * H,                     # two matmuls, 2*M*D*H each
        transcendentals=m_eff * H,                   # erf/tanh per hidden element
        bytes_accessed=int(M * D * ix + M * D * oc
                           + (2 * D * H * ic) * (grid_m if grid_h > 1 else 1)
                           + (H + D) * 4),
    )

    out = pl.pallas_call(
        partial(mlp_kernel, approximate_gelu=approximate_gelu),
        out_shape=jax.ShapeDtypeStruct((M, D), out_dtype),
        grid_spec=pltpu.PrefetchScalarGridSpec(
            num_scalar_prefetch=0,
            grid=(grid_m, grid_h),
            in_specs=in_specs,
            out_specs=out_specs,
            scratch_shapes=[pltpu.VMEM((tm, D), jnp.float32)],
        ),
        compiler_params=pltpu.CompilerParams(
            dimension_semantics=("parallel", "arbitrary"),
            vmem_limit_bytes=vmem_limit),
        cost_estimate=cost,
    )(x2, wfc, bfc2, wpj, bpj2)

    return out.reshape(B, T, D)


def mlp_reference(x, w_fc, b_fc, w_proj, b_proj):
    h = x @ w_fc + b_fc
    h = 0.5 * h * (1.0 + jax.lax.erf(h / jnp.sqrt(2.0)))
    return h @ w_proj + b_proj


if __name__ == "__main__":
    key = jax.random.PRNGKey(0)

    # ---- primary test: GPTConfig-like tiny shapes (n_embd=32, batch=2, seq=8)
    B, T, D = 2, 8, 32
    H = 4 * D
    kx, k1, k2, k3, k4, k5 = jax.random.split(key, 6)
    x = jax.random.normal(kx, (B, T, D), dtype=jnp.float32)
    w_fc = jax.random.normal(k1, (D, H), dtype=jnp.float32) * 0.02
    b_fc = jax.random.normal(k2, (H,), dtype=jnp.float32) * 0.02
    w_proj = jax.random.normal(k3, (H, D), dtype=jnp.float32) * 0.02
    b_proj = jax.random.normal(k4, (D,), dtype=jnp.float32) * 0.02

    y_ref = mlp_reference(x, w_fc, b_fc, w_proj, b_proj)

    # f32 compute path: strict check.
    y32 = jax.block_until_ready(
        mlp_pallas(x, w_fc, b_fc, w_proj, b_proj, compute_dtype=jnp.float32))
    assert y32.shape == (B, T, D)
    assert jnp.allclose(y32, y_ref, atol=1e-5, rtol=1e-5), "f32 mismatch vs reference"

    # Default bf16 fast path: relaxed tolerance (bf16 MXU inputs, f32 acc).
    y16 = jax.block_until_ready(mlp_pallas(x, w_fc, b_fc, w_proj, b_proj))
    assert y16.shape == (B, T, D)
    assert jnp.allclose(y16, y_ref, atol=2e-2, rtol=2e-2), "bf16 mismatch vs reference"

    # ---- secondary test: force the H-reduction (weight-streaming) path ----
    D2 = 64
    H2 = 4 * D2
    kx2, k1, k2, k3, k4 = jax.random.split(k5, 5)
    x2 = jax.random.normal(kx2, (B, T, D2), dtype=jnp.float32)
    w_fc2 = jax.random.normal(k1, (D2, H2), dtype=jnp.float32) * 0.02
    b_fc2 = jax.random.normal(k2, (H2,), dtype=jnp.float32) * 0.02
    w_proj2 = jax.random.normal(k3, (H2, D2), dtype=jnp.float32) * 0.02
    b_proj2 = jax.random.normal(k4, (D2,), dtype=jnp.float32) * 0.02
    y_ref2 = mlp_reference(x2, w_fc2, b_fc2, w_proj2, b_proj2)

    y32b = jax.block_until_ready(
        mlp_pallas(x2, w_fc2, b_fc2, w_proj2, b_proj2,
                   compute_dtype=jnp.float32, th=128))   # grid_h = 2
    assert jnp.allclose(y32b, y_ref2, atol=1e-5, rtol=1e-5), "f32 H-split mismatch"

    y16b = jax.block_until_ready(
        mlp_pallas(x2, w_fc2, b_fc2, w_proj2, b_proj2, th=128))
    assert jnp.allclose(y16b, y_ref2, atol=2e-2, rtol=2e-2), "bf16 H-split mismatch"

    print("KERNEL_OK")
</pallas_src>

<mosaic_0001>
module attributes {stable_mosaic.version = 11 : i64} {
  func.func @mlp_kernel(%arg0: i32, %arg1: i32, %arg2: memref<8x32xf32, #tpu.memory_space<vmem>>, %arg3: memref<32x128xf32, #tpu.memory_space<vmem>>, %arg4: memref<1x128xf32, #tpu.memory_space<vmem>>, %arg5: memref<128x32xf32, #tpu.memory_space<vmem>>, %arg6: memref<1x32xf32, #tpu.memory_space<vmem>>, %arg7: memref<8x32xf32, #tpu.memory_space<vmem>>, %arg8: memref<8x32xf32, #tpu.memory_space<vmem>>) attributes {dimension_semantics = [#tpu.dimension_semantics<parallel>, #tpu.dimension_semantics<arbitrary>], iteration_bounds = array<i64: 2, 1>, scalar_prefetch = 0 : i64, scratch_operands = 1 : i64, tpu.core_type = #tpu.core_type<tc>, window_params = [{transform_indices = @transform_0, window_bounds = array<i64: 8, 32>}, {pipeline_mode = #tpu.pipeline_mode<synchronous>, transform_indices = @transform_1, window_bounds = array<i64: 32, 128>}, {pipeline_mode = #tpu.pipeline_mode<synchronous>, transform_indices = @transform_2, window_bounds = array<i64: 1, 128>}, {pipeline_mode = #tpu.pipeline_mode<synchronous>, transform_indices = @transform_3, window_bounds = array<i64: 128, 32>}, {pipeline_mode = #tpu.pipeline_mode<synchronous>, transform_indices = @transform_4, window_bounds = array<i64: 1, 32>}, {transform_indices = @transform_5, window_bounds = array<i64: 8, 32>}]} {
    %c0_i32 = arith.constant 0 : i32
    %0 = arith.cmpi eq, %arg1, %c0_i32 : i32
    %1 = arith.extui %0 : i1 to i32
    %c0_i32_0 = arith.constant 0 : i32
    %2 = arith.cmpi ne, %1, %c0_i32_0 : i32
    scf.if %2 {
      %cst_18 = arith.constant 0.000000e+00 : f32
      %25 = vector.broadcast %cst_18 : f32 to vector<8x32xf32>
      %c0_19 = arith.constant 0 : index
      %c0_20 = arith.constant 0 : index
      %26 = vector.load %arg8[%c0_19, %c0_20] : memref<8x32xf32, #tpu.memory_space<vmem>>, vector<8x32xf32>
      tpu.vector_store %arg8[%c0_19, %c0_20], %25 {strides = array<i32>} : memref<8x32xf32, #tpu.memory_space<vmem>>, vector<8x32xf32>,
    } else {
    }
    %c0 = arith.constant 0 : index
    %c0_1 = arith.constant 0 : index
    %3 = vector.load %arg2[%c0, %c0_1] : memref<8x32xf32, #tpu.memory_space<vmem>>, vector<8x32xf32>
    %c0_2 = arith.constant 0 : index
    %c0_3 = arith.constant 0 : index
    %4 = vector.load %arg3[%c0_2, %c0_3] : memref<32x128xf32, #tpu.memory_space<vmem>>, vector<32x128xf32>
    %cst = arith.constant dense<0.000000e+00> : vector<8x128xf32>
    %5 = tpu.matmul %3, %4, %cst {dimension_numbers = #tpu.dot_dimension_numbers<[1], [0], [0], [1], [0, 0, 1, 1], [], []>} : vector<8x32xf32>, vector<32x128xf32>, vector<8x128xf32> -> vector<8x128xf32>
    %c0_4 = arith.constant 0 : index
    %c0_5 = arith.constant 0 : index
    %6 = vector.load %arg4[%c0_4, %c0_5] : memref<1x128xf32, #tpu.memory_space<vmem>>, vector<1x128xf32>
    %7 = vector.broadcast %6 : vector<1x128xf32> to vector<8x128xf32>
    %8 = arith.addf %5, %7 : vector<8x128xf32>
    %cst_6 = arith.constant 5.000000e-01 : f32
    %9 = vector.broadcast %cst_6 : f32 to vector<8x128xf32>
    %10 = arith.mulf %9, %8 : vector<8x128xf32>
    %cst_7 = arith.constant 0.707106769 : f32
    %11 = vector.broadcast %cst_7 : f32 to vector<8x128xf32>
    %12 = arith.mulf %8, %11 : vector<8x128xf32>
    %13 = math.erf %12 : vector<8x128xf32>
    %cst_8 = arith.constant 1.000000e+00 : f32
    %14 = vector.broadcast %cst_8 : f32 to vector<8x128xf32>
    %15 = arith.addf %14, %13 : vector<8x128xf32>
    %16 = arith.mulf %10, %15 : vector<8x128xf32>
    %c0_9 = arith.constant 0 : index
    %c0_10 = arith.constant 0 : index
    %17 = vector.load %arg8[%c0_9, %c0_10] : memref<8x32xf32, #tpu.memory_space<vmem>>, vector<8x32xf32>
    %c0_11 = arith.constant 0 : index
    %c0_12 = arith.constant 0 : index
    %18 = vector.load %arg5[%c0_11, %c0_12] : memref<128x32xf32, #tpu.memory_space<vmem>>, vector<128x32xf32>
    %cst_13 = arith.constant dense<0.000000e+00> : vector<8x32xf32>
    %19 = tpu.matmul %16, %18, %cst_13 {dimension_numbers = #tpu.dot_dimension_numbers<[1], [0], [0], [1], [0, 0, 1, 1], [], []>} : vector<8x128xf32>, vector<128x32xf32>, vector<8x32xf32> -> vector<8x32xf32>
    %20 = arith.addf %17, %19 : vector<8x32xf32>
    %c0_14 = arith.constant 0 : index
    %c0_15 = arith.constant 0 : index
    %21 = vector.load %arg8[%c0_14, %c0_15] : memref<8x32xf32, #tpu.memory_space<vmem>>, vector<8x32xf32>
    tpu.vector_store %arg8[%c0_14, %c0_15], %20 {strides = array<i32>} : memref<8x32xf32, #tpu.memory_space<vmem>>, vector<8x32xf32>,
    %c0_i32_16 = arith.constant 0 : i32
    %22 = arith.cmpi eq, %arg1, %c0_i32_16 : i32
    %23 = arith.extui %22 : i1 to i32
    %c0_i32_17 = arith.constant 0 : i32
    %24 = arith.cmpi ne, %23, %c0_i32_17 : i32
    scf.if %24 {
      %c0_18 = arith.constant 0 : index
      %c0_19 = arith.constant 0 : index
      %25 = vector.load %arg8[%c0_18, %c0_19] : memref<8x32xf32, #tpu.memory_space<vmem>>, vector<8x32xf32>
      %c0_20 = arith.constant 0 : index
      %c0_21 = arith.constant 0 : index
      %26 = vector.load %arg6[%c0_20, %c0_21] : memref<1x32xf32, #tpu.memory_space<vmem>>, vector<1x32xf32>
      %27 = vector.broadcast %26 : vector<1x32xf32> to vector<8x32xf32>
      %28 = arith.addf %25, %27 : vector<8x32xf32>
      %c0_22 = arith.constant 0 : index
      %c0_23 = arith.constant 0 : index
      %29 = vector.load %arg7[%c0_22, %c0_23] : memref<8x32xf32, #tpu.memory_space<vmem>>, vector<8x32xf32>
      tpu.vector_store %arg7[%c0_22, %c0_23], %28 {strides = array<i32>} : memref<8x32xf32, #tpu.memory_space<vmem>>, vector<8x32xf32>,
    } else {
    }
    return
  }
  func.func @transform_0(%arg0: i32, %arg1: i32) -> (i32, i32) {
    %c0_i32 = arith.constant 0 : i32
    %c0_i32_0 = arith.constant 0 : i32
    return %arg0, %c0_i32 : i32, i32
  }
  func.func @transform_1(%arg0: i32, %arg1: i32) -> (i32, i32) {
    %c0_i32 = arith.constant 0 : i32
    %c0_i32_0 = arith.constant 0 : i32
    return %c0_i32, %arg1 : i32, i32
  }
  func.func @transform_2(%arg0: i32, %arg1: i32) -> (i32, i32) {
    %c0_i32 = arith.constant 0 : i32
    %c0_i32_0 = arith.constant 0 : i32
    return %c0_i32, %arg1 : i32, i32
  }
  func.func @transform_3(%arg0: i32, %arg1: i32) -> (i32, i32) {
    %c0_i32 = arith.constant 0 : i32
    %c0_i32_0 = arith.constant 0 : i32
    return %arg1, %c0_i32 : i32, i32
  }
  func.func @transform_4(%arg0: i32, %arg1: i32) -> (i32, i32) {
    %c0_i32 = arith.constant 0 : i32
    %c0_i32_0 = arith.constant 0 : i32
    %c0_i32_1 = arith.constant 0 : i32
    return %c0_i32, %c0_i32_0 : i32, i32
  }
  func.func @transform_5(%arg0: i32, %arg1: i32) -> (i32, i32) {
    %c0_i32 = arith.constant 0 : i32
    %c0_i32_0 = arith.constant 0 : i32
    return %arg0, %c0_i32 : i32, i32
  }
}

</mosaic_0001>

<bundles_post_ra>
// kernel: tpu_custom_call.1
= control target key start
LH: loop header
LB: loop body
LE: loop exit
PB: predicated region body
PF: predicated region fallthrough
CT: control target
= control target key end

     0   :  { %10 = vsyncpa [#allocation4], 0  ;;  %s1056_s0 = inlined_call_operand.vmem [shape: f32[16,32], index: 0, kind: input, shape index: {}]   ;;  %s1057_s1 = inlined_call_operand.vmem [shape: f32[32,128], index: 1, kind: input, shape index: {}]   ;;  %s1058_s2 = inlined_call_operand.vmem [shape: f32[1,128], index: 2, kind: input, shape index: {}]   ;;  %s1059_s3 = inlined_call_operand.vmem [shape: f32[128,32], index: 3, kind: input, shape index: {}]   ;;  %s1060_s4 = inlined_call_operand.vmem [shape: f32[1,32], index: 4, kind: input, shape index: {}]   ;;  %s1061_s5 = inlined_call_operand.hbm [shape: f32[16,32], index: 5, kind: output, shape index: {}]  }
   0x1   :  { %12 = vsyncpa [#allocation4 + $0x1], 0  ;;  %s862_s18 = smov 0   ;;  %s864_s19 = smov 0  }
   0x2   :  { %s866_s20 = smov 0   ;;  %s868_s21 = smov 0  }
   0x3   :  { %s870_s22 = smov 0   ;;  %s872_s23 = smov 0  }
   0x4 LB: > { %s607_s24 = sadd.s32 4294967295, %s827_s23   ;;  %s608_s25 = sadd.s32 4294967294, %s827_s23   ;;  %s827_s23 = sphi %s872_s23, %s18_s23   ;;  %s823_s22 = sphi %s870_s22, %s1068_s22   ;;  %s819_s21 = sphi %s868_s21, %s1067_s21   ;;  %s815_s20 = sphi %s866_s20, %s1066_s20   ;;  %s811_s19 = sphi %s864_s19, %s1065_s19   ;;  %s807_s18 = sphi %s862_s18, %s1064_s18  }
   0x5   : > { %s30_s26 = sadd.s32 1, %s823_s22  ;;  %s162_s27 = sadd.s32 1, %s815_s20 }
   0x6   : > { %p32_p0 = scmp.ge.s32.totalorder %s30_s26, 2  ;;  %p172_p1 = scmp.ne.s32.totalorder %s815_s20, %s811_s19 }
   0x7   : > { %p173_p2 = scmp.eq.s32.totalorder %s607_s24, 1  ;;  %p178_p3 = scmp.ne.s32.totalorder %s811_s19, %s807_s18 }
   0x8   : > { %s1070_s26 = smov (%p32_p0, %s30_s26), 0  ;;  %p179_p5 = scmp.eq.s32.totalorder %s608_s25, 1 }
   0x9   : > { %p902_p4 = por %p173_p2, %p172_p1  ;;  %s159_s29 = ssub.s32 %s823_s22, %s1070_s26 }
   0xa   : > { %p614_p6 = scmp.ge.s32.totalorder %s827_s23, 1  ;;  %p160_p7 = scmp.eq.s32.totalorder %s159_s29, 0 }
   0xb   : > { %p909_p8 = por %p179_p5, %p178_p3  ;;  %p229_p9 = scmp.lt.s32.totalorder %s827_s23, 3 }
   0xc   : > { %s915_s6 = scalar_select %p160_p7, %s815_s20, %s162_s27  }
   0xd   : > { %p230_p10 = pnand %p614_p6, %p229_p9 }
   0xe   : > { %p268_p11 = scmp.lt.s32.totalorder (!%p230_p10), %s819_s21, 1  ;;  %s265_s9 = sand.u32 (!%p230_p10), 1, %s811_s19  }
   0xf   : > { %233 = sbr.rel (%p230_p10) target bundleno = 462 (0x1ce), region = 40  ;;  %s485_s25 = scalar_lea.sflag (!%p230_p10), [#allocation4], %s265_s9 }
  0x10   : > { %s831_s29 = smov (!%p230_p10), [#allocation3]  }
  0x11   : > { %s755_s7 = sshll.u32 (!%p230_p10), %s831_s29, 4  ;;  %s756_s7 = int_to_ptr.vmem [resolvable:$false] %s755_s7 }
  0x14   : > { %v295_v0 = vld [vmem:[%s1057_s1 + $0x18] sm:$0xff]  ;;  %v829_v1 = vmov 0.0   ;;  %v294_v2 = vld [vmem:[%s1057_s1 + $0x10] sm:$0xff]  ;;  %vm830_vm0 = vmmov 0   ;;  %vm289_vm1 = vcmask 261120   ;;  %s269_s13 = scalar_select %p268_p11, %s819_s21, 1 }
  0x15   : > { %646 = vmatprep.subr.mxu0 %v829_v1  ;;  %654 = vmatprep.mubr.msk.f32.mxu0 %vm830_vm0, %v829_v1  ;;  %v398_v3 = vld [vmem:[%s1059_s3 + $0x78] sm:$0xff]  ;;  %290 = vst.msk [vmem:[#allocation2] sm:$0xff] %vm289_vm1, %v829_v1  ;;  %v397_v4 = vld [vmem:[%s1059_s3 + $0x70] sm:$0xff]  ;;  %v293_v5 = vld [vmem:[%s1057_s1 + $0x8] sm:$0xff] }
  0x16   : > { %647 = vmatpush3.msra.mxu0 %v295_v0  ;;  %657 = vmatprep.subr.mxu1 %v829_v1  ;;  %s616_s24 = sshll.u32 %s269_s13, 3  ;;  %v396_v6 = vld [vmem:[%s1059_s3 + $0x68] sm:$0xff]  ;;  %v292_v7 = vld [vmem:[%s1057_s1] sm:$0xff]  ;;  %v394_v10 = vld [vmem:[%s1059_s3 + $0x58] sm:$0xff]  ;;  %s621_s13 = sshll.u32 %s819_s21, 7 }
  0x17   : > { %648 = vmatprep.subr.mxu0 %v829_v1  ;;  %658 = vmatpush3.msra.mxu1 %v398_v3  ;;  %s271_s10 = scalar_lea.vmem %s1056_s0, %s616_s24  ;;  %v395_v9 = vld [vmem:[%s1059_s3 + $0x60] sm:$0xff]  ;;  %v393_v11 = vld [vmem:[%s1059_s3 + $0x50] sm:$0xff]  ;;  %v392_v12 = vld [vmem:[%s1059_s3 + $0x48] sm:$0xff]  ;;  %s496_s24 = scalar_lea.hbm %s1061_s5, %s621_s13 }
  0x18   : > { %649 = vmatpush3.msra.mxu0 %v294_v2  ;;  %659 = vmatprep.subr.mxu1 %v829_v1  ;;  %v291_v8 = vld [vmem:[%s271_s10] sm:$0xff]  ;;  %v390_v14 = vld [vmem:[%s1059_s3 + $0x38] sm:$0xff]  ;;  %v389_v15 = vld [vmem:[%s1059_s3 + $0x30] sm:$0xff]  ;;  %s615_s10 = sshll.u32 %s265_s9, 3  ;;  %s757_s21 = scalar_lea.vmem %s756_s7, 256 }
  0x19   : > { %650 = vmatprep.subr.mxu0 %v829_v1  ;;  %660 = vmatpush3.msra.mxu1 %v397_v4  ;;  %v391_v13 = vld [vmem:[%s1059_s3 + $0x40] sm:$0xff]  ;;  %v388_v16 = vld [vmem:[%s1059_s3 + $0x28] sm:$0xff]  ;;  %v386_v18 = vld [vmem:[%s1059_s3 + $0x18] sm:$0xff]  ;;  %s267_s14 = scalar_lea.vmem [#allocation3], %s615_s10 }
  0x1a   : > { %651 = vmatpush3.msra.mxu0 %v293_v5  ;;  %661 = vmatprep.subr.mxu1 %v829_v1  ;;  %v387_v17 = vld [vmem:[%s1059_s3 + $0x20] sm:$0xff]  ;;  %v385_v19 = vld [vmem:[%s1059_s3 + $0x10] sm:$0xff]  ;;  %v384_v20 = vld [vmem:[%s1059_s3 + $0x8] sm:$0xff]  ;;  %s498_s15 = sshll.u32 %s267_s14, 4  ;;  %s499_s15 = int_to_ptr.vmem [resolvable:$true] %s498_s15 }
  0x1b   : > { %652 = vmatprep.subr.mxu0 %v829_v1  ;;  %662 = vmatpush3.msra.mxu1 %v396_v6  ;;  %v383_v21 = vld [vmem:[%s1059_s3] sm:$0xff]  ;;  %s751_s27 = scalar_lea.vmem %s499_s15, 128  ;;  %p758_p1 = scmp.lt.s32.totalorder %s499_s15, %s756_s7 }
  0x1c   : > { %653 = vmatpush3.msra.mxu0 %v292_v7  ;;  %663 = vmatprep.subr.mxu1 %v829_v1  ;;  %v617_v22 = vld [vmem:[%s1058_s2] ss:$0 sm:$0xff]  ;;  %p752_p12 = scmp.ne.s32.totalorder %s499_s15, %s751_s27  ;;  %p759_p2 = scmp.lt.s32.totalorder %s757_s21, %s751_s27 }
  0x1d   : > { %655 = vmatmul.mubr.msk.f32.vlgmr.msra.gmra.mxu0 %vm289_vm1, %v291_v8  ;;  %664 = vmatpush3.msra.mxu1 %v395_v9  ;;  %v382_v31 = vld [vmem:[#allocation2] sm:$0xff] }
  0x1e   : > { %665 = vmatprep.subr.mxu1 %v829_v1  ;;  %689 = vmatprep.mubr.msk.f32.mxu1 %vm830_vm0, %v829_v1  ;;  %v619_v35 = vld [vmem:[%s1060_s4] ss:$0 sm:$0xff]  ;;  %p753_p13 = pnand %p752_p12, %p902_p4  ;;  %p760_p3 = por %p759_p2, %p758_p1 }
  0x1f   : > { %666 = vmatpush3.msra.mxu1 %v394_v10 }
  0x20   : > { %667 = vmatprep.subr.mxu1 %v829_v1  ;;  %p754_p0 = pneg %p753_p13 }
  0x21   : > { %668 = vmatpush3.msra.mxu1 %v393_v11 }
  0x22   : > { %669 = vmatprep.subr.mxu1 %v829_v1  ;;  %p761_p5 = pnand %p760_p3, %p754_p0 }
  0x23   : > { %670 = vmatpush3.msra.mxu1 %v392_v12 }
  0x24   : > { %671 = vmatprep.subr.mxu1 %v829_v1 }
  0x25   : > { %672 = vmatpush3.msra.mxu1 %v391_v13 }
  0x26   : > { %673 = vmatprep.subr.mxu1 %v829_v1 }
  0x27   : > { %674 = vmatpush3.msra.mxu1 %v390_v14 }
  0x28   : > { %675 = vmatprep.subr.mxu1 %v829_v1 }
  0x29   : > { %676 = vmatpush3.msra.mxu1 %v389_v15 }
  0x2a   : > { %677 = vmatprep.subr.mxu1 %v829_v1 }
  0x2b   : > { %678 = vmatpush3.msra.mxu1 %v388_v16 }
  0x2c   : > { %679 = vmatprep.subr.mxu1 %v829_v1 }
  0x2d   : > { %680 = vmatpush3.msra.mxu1 %v387_v17 }
  0x2e   : > { %681 = vmatprep.subr.mxu1 %v829_v1 }
  0x2f   : > { %682 = vmatpush3.msra.mxu1 %v386_v18 }
  0x30   : > { %683 = vmatprep.subr.mxu1 %v829_v1 }
  0x31   : > { %684 = vmatpush3.msra.mxu1 %v385_v19 }
  0x32   : > { %685 = vmatprep.subr.mxu1 %v829_v1 }
  0x33   : > { %686 = vmatpush3.msra.mxu1 %v384_v20 }
  0x34   : > { %687 = vmatprep.subr.mxu1 %v829_v1 }
  0x35   : > { %688 = vmatpush3.msra.mxu1 %v383_v21 }
  0xdd   : > { %v373_v23 = vpop.f32.mrf.mxu0 }
  0xde   : > { %v374_v24 = vadd.f32 %v617_v22, %v373_v23 }
  0xdf   : > { %v656_v25 = vpop.f32.mrf.mxu0 }
  0xe0   : > { %v378_v26 = vmul.f32 0.70710677, %v374_v24  ;;  %v377_v28 = vmul.f32 0.5, %v374_v24 }
  0xe2   : > { %749 = verf.f32 %v378_v26 }
  0xef   : > { %v750_v27 = vpop.eup %749 }
  0xf0   : > { %v380_v29 = vadd.f32 1.0, %v750_v27 }
  0xf2   : > { %v381_v30 = vmul.f32 %v380_v29, %v377_v28 }
  0xf4   : > { %690 = vmatmul.mubr.f32.vlgmr.msra.gmra.mxu1 %v381_v30 }
 0x1b4   : > { %v465_v32 = vpop.f32.mrf.mxu1 }
 0x1b5   : > { %v469_v33 = vadd.f32 %v465_v32, %v382_v31 }
 0x1b6   : > { %v691_v34 = vpop.f32.mrf.mxu1 }
 0x1b7   : > { %470 = vst.msk [vmem:[#allocation2] sm:$0xff] %vm289_vm1, %v469_v33 }
 0x1be   : > { %v474_v36 = vld [vmem:[#allocation2] sm:$0xff] }
 0x1bf   : > { %v482_v37 = vadd.f32 %v619_v35, %v474_v36 }
 0x1c1   : > { %483 = vst.msk [vmem:[%s267_s14] sm:$0xff] %vm289_vm1, %v482_v37 }
 0x1c2   : > { %764 = shalt.err (!%p761_p5)
}
 0x1c3   : > { %s765_s8 = scalar_lea.hbm %s496_s24, 128  ;;  %s769_s11 = scalar_lea.hbm %s1061_s5, 256 }
 0x1c4   : > { %p766_p6 = scmp.ne.s32.totalorder %s496_s24, %s765_s8  ;;  %p770_p10 = scmp.lt.s32.totalorder %s496_s24, %s1061_s5 }
 0x1c5   : > { %p771_p11 = scmp.lt.s32.totalorder %s769_s11, %s765_s8 }
 0x1c6   : > { %p767_p7 = pnand %p766_p6, %p902_p4 }
 0x1c7   : > { %p772_p12 = por %p771_p11, %p770_p10 }
 0x1c8   : > { %p768_p9 = pneg %p767_p7 }
 0x1ca   : > { %p773_p13 = pnand %p772_p12, %p768_p9 }
 0x1cc   : > { %776 = shalt.err (!%p773_p13)
}
 0x1cd   : > { %692 = dma.vmem_to_hbm [thread:$0]  (%p902_p4), %s499_s15, 128, %s496_s24, %s485_s25  }
 0x1ce PF: > { %p698_p0 = scmp.ge.s32.totalorder %s827_s23, 2  ;;  %s510_s14 = sand.u32 1, %s807_s18  }
 0x1cf   : > { %s511_s16 = scalar_lea.sflag [#allocation4], %s510_s14 }
 0x1d0   : > { %p695_p1 = pnand %p698_p0, %p909_p8 }
 0x1d2   : > { %p696_p2 = pneg %p695_p1 }
 0x1d4   : > { %802 = dma.done.wait (%p696_p2), %s511_s16, 128  }
 0x1d5   : > { %804 = vsyncadd (%p696_p2), %s511_s16, 4294967168  ;;  %s18_s23 = sadd.s32 1, %s827_s23   ;;  %s1064_s18 = smov %s811_s19 }
 0x1d6   : > { %p15_p3 = scmp.ge.s32.totalorder %s18_s23, 4   ;;  %s1065_s19 = smov %s815_s20 }
 0x1d7   : > { %s1066_s20 = smov %s915_s6  ;;  %s1067_s21 = smov %s823_s22 }
 0x1d8   : > { %s1068_s22 = smov %s1070_s26  ;;  %17 = sbr.rel (!%p15_p3) target bundleno = 4 (0x4), region = 92 }
 0x1dd   :  { %516 = vsyncpa [#allocation4], 1 }
 0x1de   :  { %518 = vsyncpa [#allocation4 + $0x1], 1 }

</bundles_post_ra>
